<compile_context>
chip_gen: v7x
topology: tpu7x:2x2x1
jax: 0.10.0
libtpu: 0.0.40
codegen_flags: <defaults>
</compile_context>

<pallas_src>
import functools

import numpy as np
import jax
import jax.numpy as jnp
from jax.experimental import pallas as pl
from jax.experimental.pallas import tpu as pltpu

BN_EPS = 1e-5


def _round_up(x, m):
    return (x + m - 1) // m * m


def _default_vmem_limit():
    # Generation-adaptive scoped-VMEM budget: ~3/4 of physical, capped at 96 MiB
    # (v5e/v6e: 96 MiB of 128 MiB physical; v7x: 48 MiB of 64 MiB physical).
    try:
        cap = int(pltpu.get_tpu_info().vmem_capacity_bytes)
    except Exception:
        cap = 64 * 1024 * 1024
    return max(32 * 1024 * 1024, min(96 * 1024 * 1024, (3 * cap) // 4))


_VMEM_LIMIT = _default_vmem_limit()


# --------------------------------------------------------------------------- #
# Pass 1: per-channel sum(x) and Gram matrix G = X @ X^T over the lane axis.
# Grid = (split, batch, tiles); the leading "parallel" split axis lets v7x's
# two TensorCores each produce a partial (sum, Gram) slab.  Output block
# indices depend only on the split index => resident f32 accumulators across
# the two trailing "arbitrary" axes.
# --------------------------------------------------------------------------- #
def _stats_kernel(x_ref, sum_ref, gram_ref):
    @pl.when((pl.program_id(1) == 0) & (pl.program_id(2) == 0))
    def _init():
        sum_ref[...] = jnp.zeros_like(sum_ref)
        gram_ref[...] = jnp.zeros_like(gram_ref)

    x = x_ref[...]                                        # (Cin2, TILE_N)
    sum_ref[...] += jnp.sum(x.astype(jnp.float32), axis=1, keepdims=True)
    gram_ref[...] += jax.lax.dot_general(                 # (Cin2, Cin2) on MXU, f32 acc
        x, x, (((1,), (1,)), ((), ())),
        preferred_element_type=jnp.float32)


# --------------------------------------------------------------------------- #
# Pass 2: Y = relu(W_s @ X + bias).  BN stats and gamma/beta are pre-folded
# into W_s / bias, so the hot loop is matmul + broadcast add + relu with a
# lane-dense (Cout2, TILE_N) output tile.  f32 accumulation on bf16 operands.
# --------------------------------------------------------------------------- #
def _conv_bn_relu_kernel(w_ref, bias_ref, x_ref, o_ref):
    y = jnp.dot(w_ref[...], x_ref[...], preferred_element_type=jnp.float32)
    o_ref[...] = jnp.maximum(y + bias_ref[...], 0.0).astype(o_ref.dtype)


@functools.partial(jax.jit,
                   static_argnames=("tile_n", "num_splits", "compute_dtype"))
def fourier_unit_pallas(x, conv_weight, gamma, beta, running_stats=None, *,
                        tile_n=1024, num_splits=2, compute_dtype=jnp.bfloat16):
    """FourierUnit.forward, default config: groups=1, no spatial scaling,
    no spectral_pos_encoding, no SE, ffc3d=False, fft_norm='ortho'.

    x:             (B, C, H, W) float32 NCHW
    conv_weight:   (2*Cout, 2*Cin, 1, 1)  PyTorch Conv2d layout (no bias)
    gamma/beta:    (2*Cout,)              BatchNorm2d affine params
    running_stats: optional (running_mean, running_var) of the conv output
                   (eval-mode BN) — skips the batch-statistics pass entirely.
    returns:       (B, Cout, H, W) float32
    """
    B, C, H, W = x.shape
    Cout2, Cin2 = conv_weight.shape[0], conv_weight.shape[1]
    Cout = Cout2 // 2
    assert Cin2 == 2 * C

    # ---- rfft2 over (H, W), norm='ortho'.
    # TODO(synk): FFT itself stays in jnp.fft — there is no Pallas FFT primitive.
    ffted = jnp.fft.rfft2(x.astype(jnp.float32), norm="ortho")   # (B, C, H, Wr) complex
    Wr = ffted.shape[-1]

    # (B, C, 2, H, Wr) -> (B, 2C, H*Wr); channel order c0_re, c0_im, c1_re, ...
    # No transpose: channels already precede the flattened spatial axis.
    fr = jnp.stack((jnp.real(ffted), jnp.imag(ffted)), axis=2)
    Npb = H * Wr
    x_t = fr.reshape(B, Cin2, Npb).astype(compute_dtype)

    # ---- lane-axis tiling (per-batch), zero-padded so every block is 128-dense.
    tile = min(_round_up(tile_n, 128), _round_up(Npb, 128))
    n_pad = _round_up(Npb, tile)
    n_tiles = n_pad // tile
    ns = max(1, min(num_splits, n_tiles))       # effective TC splits for pass 1
    if n_tiles % ns:
        n_tiles = _round_up(n_tiles, ns)
        n_pad = n_tiles * tile
    if n_pad != Npb:
        # zero columns contribute nothing to the sums; padded outputs are sliced off.
        x_t = jnp.pad(x_t, ((0, 0), (0, 0), (0, n_pad - Npb)))
    tiles_per_split = n_tiles // ns

    w_mat = conv_weight.reshape(Cout2, Cin2).astype(jnp.float32)

    if running_stats is None:
        # ---- pass 1: global BN batch statistics (sum_x, Gram) over B * Npb ----
        sum_p, gram_p = pl.pallas_call(
            _stats_kernel,
            out_shape=(jax.ShapeDtypeStruct((ns, Cin2, 1), jnp.float32),
                       jax.ShapeDtypeStruct((ns, Cin2, Cin2), jnp.float32)),
            grid=(ns, B, tiles_per_split),
            in_specs=[pl.BlockSpec(
                (pl.Squeezed(), Cin2, tile),
                lambda s, b, i: (b, 0, s * tiles_per_split + i))],
            out_specs=(pl.BlockSpec((pl.Squeezed(), Cin2, 1),
                                    lambda s, b, i: (s, 0, 0)),
                       pl.BlockSpec((pl.Squeezed(), Cin2, Cin2),
                                    lambda s, b, i: (s, 0, 0))),
            compiler_params=pltpu.CompilerParams(
                dimension_semantics=("parallel", "arbitrary", "arbitrary"),
                vmem_limit_bytes=_VMEM_LIMIT),
        )(x_t)

        # ---- fold batch stats + gamma/beta into conv weight & per-channel bias ----
        inv_n = 1.0 / float(B * Npb)                     # true element count, not padded
        mean_x = jnp.sum(sum_p[:, :, 0], axis=0) * inv_n             # (Cin2,)
        exx = jnp.sum(gram_p, axis=0) * inv_n                        # E[x x^T]
        mean_y = w_mat @ mean_x                                      # (Cout2,)
        ey2 = jnp.sum((w_mat @ exx) * w_mat, axis=1)                 # diag(W E[xx^T] W^T)
        var_y = jnp.maximum(ey2 - mean_y * mean_y, 0.0)              # biased var (BN train)
    else:
        # Eval-mode BN: stats are constants, no stats pass needed.
        mean_y = running_stats[0].astype(jnp.float32)
        var_y = running_stats[1].astype(jnp.float32)

    scale = gamma.astype(jnp.float32) * jax.lax.rsqrt(var_y + BN_EPS)
    bias = beta.astype(jnp.float32) - mean_y * scale
    w_scaled = (w_mat * scale[:, None]).astype(compute_dtype)        # (Cout2, Cin2)
    bias_col = bias[:, None]                                         # (Cout2, 1) f32

    # ---- pass 2: matmul + bias + relu, lane-dense tiles, parallel over (B, N) ----
    y_t = pl.pallas_call(
        _conv_bn_relu_kernel,
        out_shape=jax.ShapeDtypeStruct((B, Cout2, n_pad), compute_dtype),
        grid=(B, n_tiles),
        in_specs=[pl.BlockSpec((Cout2, Cin2), lambda b, i: (0, 0)),    # resident weight
                  pl.BlockSpec((Cout2, 1), lambda b, i: (0, 0)),       # resident bias
                  pl.BlockSpec((pl.Squeezed(), Cin2, tile),
                               lambda b, i: (b, 0, i))],
        out_specs=pl.BlockSpec((pl.Squeezed(), Cout2, tile),
                               lambda b, i: (b, 0, i)),
        compiler_params=pltpu.CompilerParams(
            dimension_semantics=("parallel", "parallel"),
            vmem_limit_bytes=_VMEM_LIMIT),
    )(w_scaled, bias_col, x_t)

    # ---- back to complex spectrum and irfft2 (no reverse transpose needed) ----
    y = y_t[:, :, :Npb].astype(jnp.float32).reshape(B, Cout, 2, H, Wr)
    y_c = jax.lax.complex(y[:, :, 0], y[:, :, 1])                    # (B, Cout, H, Wr)
    out = jnp.fft.irfft2(y_c, s=(H, W), norm="ortho")                # (B, Cout, H, W)
    return out.astype(jnp.float32)


def fourier_unit_ref(x, conv_weight, gamma, beta):
    """Pure-JAX reference (mirrors the PyTorch forward) for validation."""
    B, C, H, W = x.shape
    Cout2 = conv_weight.shape[0]
    Cout = Cout2 // 2
    ffted = jnp.fft.rfft2(x.astype(jnp.float32), norm="ortho")
    fr = jnp.stack((jnp.real(ffted), jnp.imag(ffted)), axis=2).reshape(B, 2 * C, H, -1)
    w_mat = conv_weight.reshape(Cout2, 2 * C)
    y = jnp.einsum("bchw,oc->bohw", fr, w_mat)
    mean = jnp.mean(y, axis=(0, 2, 3), keepdims=True)
    var = jnp.mean((y - mean) ** 2, axis=(0, 2, 3), keepdims=True)
    y = (y - mean) / jnp.sqrt(var + BN_EPS)
    y = y * gamma.reshape(1, -1, 1, 1) + beta.reshape(1, -1, 1, 1)
    y = jnp.maximum(y, 0.0)
    y = y.reshape(B, Cout, 2, H, -1)
    y_c = jax.lax.complex(y[:, :, 0], y[:, :, 1])
    return jnp.fft.irfft2(y_c, s=(H, W), norm="ortho")


if __name__ == "__main__":
    # Small shapes consistent with the module: B=2, in=out channels=4, 16x16 spatial.
    B, C, H, W = 2, 4, 16, 16
    Cout = 4

    key = jax.random.PRNGKey(0)
    kx, kw, kg, kb = jax.random.split(key, 4)
    x = jax.random.normal(kx, (B, C, H, W), dtype=jnp.float32)

    # Deterministic parameter init (Conv2d 1x1 no-bias weight; non-trivial BN affine).
    fan_in = 2 * C
    conv_weight = (jax.random.normal(kw, (2 * Cout, 2 * C, 1, 1), dtype=jnp.float32)
                   * (1.0 / np.sqrt(fan_in)))
    gamma = 1.0 + 0.1 * jax.random.uniform(kg, (2 * Cout,), dtype=jnp.float32)
    beta = 0.1 * jax.random.normal(kb, (2 * Cout,), dtype=jnp.float32)

    ref = jax.block_until_ready(fourier_unit_ref(x, conv_weight, gamma, beta))

    # 1) f32 path, training-mode batch stats: bit-accurate semantics check.
    out_f32 = jax.block_until_ready(
        fourier_unit_pallas(x, conv_weight, gamma, beta, compute_dtype=jnp.float32))
    assert out_f32.shape == (B, Cout, H, W)
    np.testing.assert_allclose(np.asarray(out_f32), np.asarray(ref),
                               atol=5e-4, rtol=5e-4)

    # 2) bf16 streaming path (default): fast path, looser tolerance for bf16 operands.
    out_bf16 = jax.block_until_ready(
        fourier_unit_pallas(x, conv_weight, gamma, beta))
    np.testing.assert_allclose(np.asarray(out_bf16), np.asarray(ref),
                               atol=5e-2, rtol=5e-2)

    # 3) eval-mode path: feed the batch stats as "running" stats — must match the
    #    training-mode output while skipping the stats pass entirely.
    ffted = jnp.fft.rfft2(x, norm="ortho")
    fr = jnp.stack((jnp.real(ffted), jnp.imag(ffted)), axis=2).reshape(B, 2 * C, H, -1)
    y_full = jnp.einsum("bchw,oc->bohw", fr, conv_weight.reshape(2 * Cout, 2 * C))
    mean_y = jnp.mean(y_full, axis=(0, 2, 3))
    var_y = jnp.mean((y_full - mean_y[None, :, None, None]) ** 2, axis=(0, 2, 3))
    out_eval = jax.block_until_ready(
        fourier_unit_pallas(x, conv_weight, gamma, beta, (mean_y, var_y),
                            compute_dtype=jnp.float32))
    np.testing.assert_allclose(np.asarray(out_eval), np.asarray(ref),
                               atol=5e-4, rtol=5e-4)

    print("KERNEL_OK")
</pallas_src>

<mosaic_0001>
module attributes {stable_mosaic.version = 11 : i64} {
  func.func @_stats_kernel(%arg0: i32, %arg1: i32, %arg2: i32, %arg3: memref<1x8x256xf32, #tpu.memory_space<vmem>>, %arg4: memref<1x8x1xf32, #tpu.memory_space<vmem>>, %arg5: memref<1x8x8xf32, #tpu.memory_space<vmem>>) attributes {dimension_semantics = [#tpu.dimension_semantics<parallel>, #tpu.dimension_semantics<arbitrary>, #tpu.dimension_semantics<arbitrary>], iteration_bounds = array<i64: 1, 2, 1>, scalar_prefetch = 0 : i64, scratch_operands = 0 : i64, tpu.core_type = #tpu.core_type<tc>, window_params = [{transform_indices = @transform_0, window_bounds = array<i64: 1, 8, 256>}, {transform_indices = @transform_1, window_bounds = array<i64: 1, 8, 1>}, {transform_indices = @transform_2, window_bounds = array<i64: 1, 8, 8>}]} {
    %c0_i32 = arith.constant 0 : i32
    %0 = arith.cmpi eq, %arg1, %c0_i32 : i32
    %c0_i32_0 = arith.constant 0 : i32
    %1 = arith.cmpi eq, %arg2, %c0_i32_0 : i32
    %2 = arith.andi %0, %1 : i1
    %3 = arith.extui %2 : i1 to i32
    %c0_i32_1 = arith.constant 0 : i32
    %4 = arith.cmpi ne, %3, %c0_i32_1 : i32
    scf.if %4 {
      %cst_17 = arith.constant 0.000000e+00 : f32
      %22 = vector.broadcast %cst_17 : f32 to vector<8x1xf32>
      %c0_18 = arith.constant 0 : index
      %c0_19 = arith.constant 0 : index
      %c0_20 = arith.constant 0 : index
      %23 = vector.load %arg4[%c0_18, %c0_19, %c0_20] : memref<1x8x1xf32, #tpu.memory_space<vmem>>, vector<1x8x1xf32>
      %24 = vector.shape_cast %23 : vector<1x8x1xf32> to vector<8x1xf32>
      %25 = vector.shape_cast %22 : vector<8x1xf32> to vector<1x8x1xf32>
      tpu.vector_store %arg4[%c0_18, %c0_19, %c0_20], %25 {strides = array<i32>} : memref<1x8x1xf32, #tpu.memory_space<vmem>>, vector<1x8x1xf32>,
      %cst_21 = arith.constant 0.000000e+00 : f32
      %26 = vector.broadcast %cst_21 : f32 to vector<8x8xf32>
      %c0_22 = arith.constant 0 : index
      %c0_23 = arith.constant 0 : index
      %c0_24 = arith.constant 0 : index
      %27 = vector.load %arg5[%c0_22, %c0_23, %c0_24] : memref<1x8x8xf32, #tpu.memory_space<vmem>>, vector<1x8x8xf32>
      %28 = vector.shape_cast %27 : vector<1x8x8xf32> to vector<8x8xf32>
      %29 = vector.shape_cast %26 : vector<8x8xf32> to vector<1x8x8xf32>
      tpu.vector_store %arg5[%c0_22, %c0_23, %c0_24], %29 {strides = array<i32>} : memref<1x8x8xf32, #tpu.memory_space<vmem>>, vector<1x8x8xf32>,
    } else {
    }
    %c0 = arith.constant 0 : index
    %c0_2 = arith.constant 0 : index
    %c0_3 = arith.constant 0 : index
    %5 = vector.load %arg3[%c0, %c0_2, %c0_3] : memref<1x8x256xf32, #tpu.memory_space<vmem>>, vector<1x8x256xf32>
    %6 = vector.shape_cast %5 : vector<1x8x256xf32> to vector<8x256xf32>
    %c0_4 = arith.constant 0 : index
    %c0_5 = arith.constant 0 : index
    %c0_6 = arith.constant 0 : index
    %7 = vector.load %arg4[%c0_4, %c0_5, %c0_6] : memref<1x8x1xf32, #tpu.memory_space<vmem>>, vector<1x8x1xf32>
    %8 = vector.shape_cast %7 : vector<1x8x1xf32> to vector<8x1xf32>
    %cst = arith.constant dense<0.000000e+00> : vector<8xf32>
    %9 = vector.multi_reduction <add>, %6, %cst [1] : vector<8x256xf32> to vector<8xf32>
    %10 = vector.shape_cast %9 : vector<8xf32> to vector<8x1xf32>
    %11 = arith.addf %8, %10 : vector<8x1xf32>
    %c0_7 = arith.constant 0 : index
    %c0_8 = arith.constant 0 : index
    %c0_9 = arith.constant 0 : index
    %12 = vector.load %arg4[%c0_7, %c0_8, %c0_9] : memref<1x8x1xf32, #tpu.memory_space<vmem>>, vector<1x8x1xf32>
    %13 = vector.shape_cast %12 : vector<1x8x1xf32> to vector<8x1xf32>
    %14 = vector.shape_cast %11 : vector<8x1xf32> to vector<1x8x1xf32>
    tpu.vector_store %arg4[%c0_7, %c0_8, %c0_9], %14 {strides = array<i32>} : memref<1x8x1xf32, #tpu.memory_space<vmem>>, vector<1x8x1xf32>,
    %c0_10 = arith.constant 0 : index
    %c0_11 = arith.constant 0 : index
    %c0_12 = arith.constant 0 : index
    %15 = vector.load %arg5[%c0_10, %c0_11, %c0_12] : memref<1x8x8xf32, #tpu.memory_space<vmem>>, vector<1x8x8xf32>
    %16 = vector.shape_cast %15 : vector<1x8x8xf32> to vector<8x8xf32>
    %cst_13 = arith.constant dense<0.000000e+00> : vector<8x8xf32>
    %17 = tpu.matmul %6, %6, %cst_13 {dimension_numbers = #tpu.dot_dimension_numbers<[1], [1], [0], [0], [0, 0, 1, 0], [], []>} : vector<8x256xf32>, vector<8x256xf32>, vector<8x8xf32> -> vector<8x8xf32>
    %18 = arith.addf %16, %17 : vector<8x8xf32>
    %c0_14 = arith.constant 0 : index
    %c0_15 = arith.constant 0 : index
    %c0_16 = arith.constant 0 : index
    %19 = vector.load %arg5[%c0_14, %c0_15, %c0_16] : memref<1x8x8xf32, #tpu.memory_space<vmem>>, vector<1x8x8xf32>
    %20 = vector.shape_cast %19 : vector<1x8x8xf32> to vector<8x8xf32>
    %21 = vector.shape_cast %18 : vector<8x8xf32> to vector<1x8x8xf32>
    tpu.vector_store %arg5[%c0_14, %c0_15, %c0_16], %21 {strides = array<i32>} : memref<1x8x8xf32, #tpu.memory_space<vmem>>, vector<1x8x8xf32>,
    return
  }
  func.func @transform_0(%arg0: i32, %arg1: i32, %arg2: i32) -> (i32, i32, i32) {
    %c1_i32 = arith.constant 1 : i32
    %0 = arith.muli %arg0, %c1_i32 : i32
    %1 = arith.addi %0, %arg2 : i32
    %c0_i32 = arith.constant 0 : i32
    %c0_i32_0 = arith.constant 0 : i32
    return %arg1, %c0_i32, %1 : i32, i32, i32
  }
  func.func @transform_1(%arg0: i32, %arg1: i32, %arg2: i32) -> (i32, i32, i32) {
    %c0_i32 = arith.constant 0 : i32
    %c0_i32_0 = arith.constant 0 : i32
    %c0_i32_1 = arith.constant 0 : i32
    return %arg0, %c0_i32, %c0_i32_0 : i32, i32, i32
  }
  func.func @transform_2(%arg0: i32, %arg1: i32, %arg2: i32) -> (i32, i32, i32) {
    %c0_i32 = arith.constant 0 : i32
    %c0_i32_0 = arith.constant 0 : i32
    %c0_i32_1 = arith.constant 0 : i32
    return %arg0, %c0_i32, %c0_i32_0 : i32, i32, i32
  }
}

module attributes {stable_mosaic.version = 11 : i64} {
  func.func @_conv_bn_relu_kernel(%arg0: i32, %arg1: i32, %arg2: memref<8x8xf32, #tpu.memory_space<vmem>>, %arg3: memref<8x1xf32, #tpu.memory_space<vmem>>, %arg4: memref<1x8x256xf32, #tpu.memory_space<vmem>>, %arg5: memref<1x8x256xf32, #tpu.memory_space<vmem>>) attributes {dimension_semantics = [#tpu.dimension_semantics<parallel>, #tpu.dimension_semantics<parallel>], iteration_bounds = array<i64: 2, 1>, scalar_prefetch = 0 : i64, scratch_operands = 0 : i64, tpu.core_type = #tpu.core_type<tc>, window_params = [{pipeline_mode = #tpu.pipeline_mode<synchronous>, transform_indices = @transform_0, window_bounds = array<i64: 8, 8>}, {pipeline_mode = #tpu.pipeline_mode<synchronous>, transform_indices = @transform_1, window_bounds = array<i64: 8, 1>}, {transform_indices = @transform_2, window_bounds = array<i64: 1, 8, 256>}, {transform_indices = @transform_3, window_bounds = array<i64: 1, 8, 256>}]} {
    %c0 = arith.constant 0 : index
    %c0_0 = arith.constant 0 : index
    %0 = vector.load %arg2[%c0, %c0_0] : memref<8x8xf32, #tpu.memory_space<vmem>>, vector<8x8xf32>
    %c0_1 = arith.constant 0 : index
    %c0_2 = arith.constant 0 : index
    %c0_3 = arith.constant 0 : index
    %1 = vector.load %arg4[%c0_1, %c0_2, %c0_3] : memref<1x8x256xf32, #tpu.memory_space<vmem>>, vector<1x8x256xf32>
    %2 = vector.shape_cast %1 : vector<1x8x256xf32> to vector<8x256xf32>
    %cst = arith.constant dense<0.000000e+00> : vector<8x256xf32>
    %3 = tpu.matmul %0, %2, %cst {dimension_numbers = #tpu.dot_dimension_numbers<[1], [0], [0], [1], [0, 0, 1, 1], [], []>} : vector<8x8xf32>, vector<8x256xf32>, vector<8x256xf32> -> vector<8x256xf32>
    %c0_4 = arith.constant 0 : index
    %c0_5 = arith.constant 0 : index
    %4 = vector.load %arg3[%c0_4, %c0_5] : memref<8x1xf32, #tpu.memory_space<vmem>>, vector<8x1xf32>
    %5 = vector.broadcast %4 : vector<8x1xf32> to vector<8x256xf32>
    %6 = arith.addf %3, %5 : vector<8x256xf32>
    %cst_6 = arith.constant 0.000000e+00 : f32
    %7 = vector.broadcast %cst_6 : f32 to vector<8x256xf32>
    %8 = arith.maximumf %6, %7 : vector<8x256xf32>
    %c0_7 = arith.constant 0 : index
    %c0_8 = arith.constant 0 : index
    %c0_9 = arith.constant 0 : index
    %9 = vector.load %arg5[%c0_7, %c0_8, %c0_9] : memref<1x8x256xf32, #tpu.memory_space<vmem>>, vector<1x8x256xf32>
    %10 = vector.shape_cast %9 : vector<1x8x256xf32> to vector<8x256xf32>
    %11 = vector.shape_cast %8 : vector<8x256xf32> to vector<1x8x256xf32>
    tpu.vector_store %arg5[%c0_7, %c0_8, %c0_9], %11 {strides = array<i32>} : memref<1x8x256xf32, #tpu.memory_space<vmem>>, vector<1x8x256xf32>,
    return
  }
  func.func @transform_0(%arg0: i32, %arg1: i32) -> (i32, i32) {
    %c0_i32 = arith.constant 0 : i32
    %c0_i32_0 = arith.constant 0 : i32
    %c0_i32_1 = arith.constant 0 : i32
    return %c0_i32, %c0_i32_0 : i32, i32
  }
  func.func @transform_1(%arg0: i32, %arg1: i32) -> (i32, i32) {
    %c0_i32 = arith.constant 0 : i32
    %c0_i32_0 = arith.constant 0 : i32
    %c0_i32_1 = arith.constant 0 : i32
    return %c0_i32, %c0_i32_0 : i32, i32
  }
  func.func @transform_2(%arg0: i32, %arg1: i32) -> (i32, i32, i32) {
    %c0_i32 = arith.constant 0 : i32
    %c0_i32_0 = arith.constant 0 : i32
    return %arg0, %c0_i32, %arg1 : i32, i32, i32
  }
  func.func @transform_3(%arg0: i32, %arg1: i32) -> (i32, i32, i32) {
    %c0_i32 = arith.constant 0 : i32
    %c0_i32_0 = arith.constant 0 : i32
    return %arg0, %c0_i32, %arg1 : i32, i32, i32
  }
}

</mosaic_0001>

<bundles_post_ra>
// kernel: fourier_unit_pallas.2
= control target key start
LH: loop header
LB: loop body
LE: loop exit
PB: predicated region body
PF: predicated region fallthrough
CT: control target
= control target key end

     0   :  { %s462_s9 = smov 0   ;;  %s464_s10 = smov 0   ;;  %s510_s0 = inlined_call_operand.vmem [shape: f32[2,8,256], index: 0, kind: input, shape index: {}]   ;;  %s511_s1 = inlined_call_operand.vmem [shape: f32[1,8,1], index: 1, kind: output, shape index: {0}]   ;;  %s512_s2 = inlined_call_operand.vmem [shape: f32[1,8,8], index: 2, kind: output, shape index: {1}]  }
   0x1   :  { %s466_s11 = smov 0  }
   0x2 LB: > { %s28_s12 = sadd.s32 1, %s440_s10  ;;  %p387_p0 = scmp.ge.s32.totalorder %s444_s11, 1  ;;  %s444_s11 = sphi %s466_s11, %s13_s11   ;;  %s440_s10 = sphi %s464_s10, %s514_s10   ;;  %s436_s9 = sphi %s462_s9, %s513_s9  }
   0x3   : > { %p30_p1 = scmp.ge.s32.totalorder %s28_s12, 2  ;;  %p145_p2 = scmp.lt.s32.totalorder %s444_s11, 3 }
   0x5   : > { %s516_s12 = smov (%p30_p1, %s28_s12), 0  ;;  %p146_p3 = pnand %p387_p0, %p145_p2 }
   0x6   : > { %p177_p4 = scmp.lt.s32.totalorder (!%p146_p3), %s436_s9, 1  ;;  %p195_p5 = scmp.eq.s32.totalorder (!%p146_p3), %s436_s9, 0 }
   0x7   : > { %149 = sbr.rel (%p146_p3) target bundleno = 241 (0xf1), region = 24 }
   0xe   : > { %s518_s9 = smov (!%p177_p4, %s436_s9), 1  ;;  %200 = sbr.rel (!%p195_p5) target bundleno = 21 (0x15), region = 28 }
   0xf   : > { %s395_s13 = sshll.u32 %s518_s9, 4  ;;  %vm201_vm0 = vcmask (%p195_p5), 7168   ;;  %vm203_vm1 = vcmask (%p195_p5), 64512   ;;  %v446_v0 = vmov (%p195_p5), 0.0  }
  0x10   : > { %s184_s16 = scalar_lea.vmem %s510_s0, %s395_s13  ;;  %202 = vst.msk [vmem:[%s511_s1] sm:$0xff] (%p195_p5), %vm201_vm0, %v446_v0 }
  0x11   : > { %204 = vst.msk [vmem:[%s512_s2] sm:$0xff] (%p195_p5), %vm203_vm1, %v446_v0 }
  0x15 PF: > { %v206_v1 = vld [vmem:[%s184_s16 + $0x8] sm:$0xff]  ;;  %v205_v2 = vld [vmem:[%s184_s16] sm:$0xff]  ;;  %vm212_vm2 = vcmask 7168   ;;  %vm286_vm3 = vcmask 64512  }
  0x16   : > { %215 = vmatprep.subr.mxu0 %v206_v1  ;;  %279 = vmatprep.mubr.f32.mxu0 %v206_v1  ;;  %v208_v3 = vadd.f32 %v206_v1, %v205_v2 }
  0x17   : > { %216 = vmatpush1.xpose.msra.mxu0 %v205_v2  ;;  %v207_v4 = vld [vmem:[%s511_s1] sm:$0xff] }
  0x18   : > { %209 = vadd.xlane.f32.xlu0 %v208_v3  ;;  %v214_v7 = vld [vmem:[%s512_s2] sm:$0xff] }
  0x1a   : > { %280 = vmatmul.mubr.f32.vlgmr.msra.gmra.mrb[0].mxu0 %v205_v2 }
  0xa5   : > { %v210_v5 = vpop.xlane.xlu0 %209 }
  0xa6   : > { %v211_v6 = vadd.f32 %v210_v5, %v207_v4 }
  0xa8   : > { %213 = vst.msk [vmem:[%s511_s1] sm:$0xff] %vm212_vm2, %v211_v6 }
  0xed   : > { %v281_v8 = vpop.f32.mrb[0].mxu0 }
  0xee   : > { %v285_v9 = vadd.f32 %v281_v8, %v214_v7  ;;  %v283_v10 = vpop.f32.mrb[1].mxu0 }
  0xf0   : > { %287 = vst.msk [vmem:[%s512_s2] sm:$0xff] %vm286_vm3, %v285_v9 }
  0xf1 PF: > { %s13_s11 = sadd.s32 1, %s444_s11   ;;  %s513_s9 = smov %s440_s10 }
  0xf2   : > { %p10_p6 = scmp.ge.s32.totalorder %s13_s11, 4   ;;  %s514_s10 = smov %s516_s12 }
  0xf4   :  { %12 = sbr.rel (!%p10_p6) target bundleno = 2 (0x2), region = 70 }

// kernel: fourier_unit_pallas.3
= control target key start
LH: loop header
LB: loop body
LE: loop exit
PB: predicated region body
PF: predicated region fallthrough
CT: control target
= control target key end

     0   :  { %s472_s12 = smov 0   ;;  %s474_s13 = smov 0   ;;  %s511_s0 = inlined_call_operand.vmem [shape: f32[8,8], index: 0, kind: input, shape index: {}]   ;;  %s512_s1 = inlined_call_operand.vmem [shape: f32[8,1], index: 1, kind: input, shape index: {}]   ;;  %s513_s2 = inlined_call_operand.vmem [shape: f32[2,8,256], index: 2, kind: input, shape index: {}]   ;;  %s514_s3 = inlined_call_operand.vmem [shape: f32[2,8,256], index: 3, kind: output, shape index: {}]  }
   0x1   :  { %s476_s14 = smov 0  }
   0x2 LB: > { %s25_s15 = sadd.s32 1, %s444_s13  ;;  %p389_p0 = scmp.ge.s32.totalorder %s448_s14, 1  ;;  %s448_s14 = sphi %s476_s14, %s13_s14   ;;  %s444_s13 = sphi %s474_s13, %s516_s13   ;;  %s440_s12 = sphi %s472_s12, %s515_s12  }
   0x3   : > { %p27_p1 = scmp.ge.s32.totalorder %s25_s15, 2  ;;  %p158_p2 = scmp.lt.s32.totalorder %s448_s14, 3 }
   0x5   : > { %s518_s15 = smov (%p27_p1, %s25_s15), 0  ;;  %p159_p3 = pnand %p389_p0, %p158_p2 }
   0x6   : > { %p191_p4 = scmp.lt.s32.totalorder (!%p159_p3), %s440_s12, 1  ;;  %v213_v0 = vld [vmem:[%s512_s1] sm:$0xff] (!%p159_p3)  ;;  %v450_v1 = vmov (!%p159_p3), 0.0   ;;  %v451_v2 = vmov (!%p159_p3), 0   ;;  %vm219_vm0 = vcmask (!%p159_p3), 64512  }
   0x7   : > { %162 = sbr.rel (%p159_p3) target bundleno = 238 (0xee), region = 32  ;;  %287 = vmatprep.mubr.f32.mxu0 (!%p159_p3), %v450_v1  ;;  %425 = vset.pattern.permute.xlu0 (!%p159_p3), %v451_v2  ;;  %v210_v5 = vld [vmem:[%s511_s0] sm:$0xff] (!%p159_p3) }
   0x8   : > { %216 = vperm.xlu0 (!%p159_p3), %425, %v213_v0  }
   0xe   : > { %s520_s12 = smov (!%p191_p4, %s440_s12), 1 }
   0xf   : > { %s397_s18 = sshll.u32 %s520_s12, 4 }
  0x10   : > { %s198_s21 = scalar_lea.vmem %s513_s2, %s397_s18  ;;  %s208_s26 = scalar_lea.vmem %s514_s3, %s397_s18 }
  0x11   : > { %v212_v3 = vld [vmem:[%s198_s21 + $0x8] sm:$0xff]  ;;  %v211_v4 = vld [vmem:[%s198_s21] sm:$0xff] }
  0x12   : > { %223 = vmatprep.subr.mxu0 %v212_v3 }
  0x13   : > { %224 = vmatpush1.msra.mxu0 %v211_v4 }
  0x14   : > { %394 = vmatmul.mubr.msk.f32.vlgmr.msra.gmra.mrb[0].mxu0 %vm219_vm0, %v210_v5 }
  0x87   : > { %v217_v6 = vpop.permute.xlu0 %216 }
  0xe7   : > { %v289_v7 = vpop.f32.mrb[0].mxu0 }
  0xe8   : > { %v290_v8 = vadd.f32 %v289_v7, %v217_v6  ;;  %v291_v9 = vpop.f32.mrb[1].mxu0 }
  0xe9   : > { %v292_v10 = vadd.f32 %v291_v9, %v217_v6 }
  0xea   : > { %v294_v11 = vmax.f32 %v290_v8, 0.0 }
  0xeb   : > { %v295_v12 = vmax.f32 %v292_v10, 0.0 }
  0xec   : > { %296 = vst [vmem:[%s208_s26] sm:$0xff] %v294_v11 }
  0xed   : > { %297 = vst [vmem:[%s208_s26 + $0x8] sm:$0xff] %v295_v12 }
  0xee PF: > { %s13_s14 = sadd.s32 1, %s448_s14   ;;  %s515_s12 = smov %s444_s13 }
  0xef   : > { %p10_p5 = scmp.ge.s32.totalorder %s13_s14, 4   ;;  %s516_s13 = smov %s518_s15 }
  0xf1   :  { %12 = sbr.rel (!%p10_p5) target bundleno = 2 (0x2), region = 62 }

// kernel: reverse.0
= control target key start
LH: loop header
LB: loop body
LE: loop exit
PB: predicated region body
PF: predicated region fallthrough
CT: control target
= control target key end

     0   :  { %v71_v3 = vlaneseq  ;;  %v64_v9 = vld [vmem:[#allocation0 + $0x7] ss:$-1 sm:$0xff]  ;;  %v78_v12 = vld [vmem:[#allocation0 + $0x17] ss:$-1 sm:$0xff]  ;;  %s329_s0 = inlined_call_operand.vmem [shape: f32[2,4,16,7], index: 0, kind: input, shape index: {}]   ;;  %s330_s1 = inlined_call_operand.vmem [shape: f32[2,4,16,7], index: 1, kind: output, shape index: {}]  }
   0x1   :  { %v44_v0 = vld [vmem:[%s329_s0] sm:$0xff]  ;;  %v46_v1 = vld [vmem:[%s329_s0 + $0x8] sm:$0xff]  ;;  %v48_v2 = vld [vmem:[%s329_s0 + $0x10] sm:$0xff]  ;;  %v65_v10 = vrot.slane %v64_v9, 1  ;;  %v79_v14 = vrot.slane %v78_v12, 1 }
   0x2   :  { %45 = vst [vmem:[#allocation0 + $0x8] sm:$0xff] %v44_v0  ;;  %47 = vst [vmem:[#allocation0 + $0x18] sm:$0xff] %v46_v1  ;;  %v50_v4 = vld [vmem:[%s329_s0 + $0x18] sm:$0xff]  ;;  %v52_v5 = vld [vmem:[%s329_s0 + $0x20] sm:$0xff]  ;;  %v72_v11 = vshrl.u32 %v71_v3, 7 }
   0x3   :  { %49 = vst [vmem:[#allocation0 + $0x28] sm:$0xff] %v48_v2  ;;  %v54_v6 = vld [vmem:[%s329_s0 + $0x28] sm:$0xff]  ;;  %51 = vst [vmem:[#allocation0 + $0x38] sm:$0xff] %v50_v4  ;;  %v56_v7 = vld [vmem:[%s329_s0 + $0x30] sm:$0xff] }
   0x4   :  { %53 = vst [vmem:[#allocation0 + $0x48] sm:$0xff] %v52_v5  ;;  %55 = vst [vmem:[#allocation0 + $0x58] sm:$0xff] %v54_v6  ;;  %v58_v8 = vld [vmem:[%s329_s0 + $0x38] sm:$0xff]  ;;  %v92_v13 = vld [vmem:[#allocation0 + $0x27] ss:$-1 sm:$0xff]  ;;  %vm73_vm0 = vcmp.lt.s32.totalorder %v72_v11, 7 }
   0x5   :  { %57 = vst [vmem:[#allocation0 + $0x68] sm:$0xff] %v56_v7  ;;  %59 = vst [vmem:[#allocation0 + $0x78] sm:$0xff] %v58_v8  ;;  %v93_v15 = vrot.slane %v92_v13, 1  ;;  %v106_v16 = vld [vmem:[#allocation0 + $0x37] ss:$-1 sm:$0xff] }
   0x6   :  { %66 = vst [vmem:[#allocation1] sm:$0xff] %v65_v10  ;;  %v107_v17 = vrot.slane %v106_v16, 1  ;;  %v120_v18 = vld [vmem:[#allocation0 + $0x47] ss:$-1 sm:$0xff]  ;;  %v134_v19 = vld [vmem:[#allocation0 + $0x57] ss:$-1 sm:$0xff] }
   0x7   :  { %80 = vst [vmem:[#allocation1 + $0x8] sm:$0xff] %v79_v14  ;;  %94 = vst [vmem:[#allocation1 + $0x10] sm:$0xff] %v93_v15  ;;  %v121_v20 = vrot.slane %v120_v18, 1  ;;  %v135_v21 = vrot.slane %v134_v19, 1  ;;  %v148_v22 = vld [vmem:[#allocation0 + $0x67] ss:$-1 sm:$0xff] }
   0x8   :  { %v162_v23 = vld [vmem:[#allocation0 + $0x77] ss:$-1 sm:$0xff]  ;;  %108 = vst [vmem:[#allocation1 + $0x18] sm:$0xff] %v107_v17  ;;  %v149_v24 = vrot.slane %v148_v22, 1 }
   0x9   :  { %v163_v25 = vrot.slane %v162_v23, 1  ;;  %v69_v26 = vld [vmem:[#allocation0 + $0xf] ss:$-1 sm:$0xff]  ;;  %v83_v27 = vld [vmem:[#allocation0 + $0x1f] ss:$-1 sm:$0xff]  ;;  %122 = vst [vmem:[#allocation1 + $0x20] sm:$0xff] %v121_v20 }
   0xa   :  { %v97_v28 = vld [vmem:[#allocation0 + $0x2f] ss:$-1 sm:$0xff]  ;;  %136 = vst [vmem:[#allocation1 + $0x28] sm:$0xff] %v135_v21  ;;  %v70_v29 = vrot.slane %v69_v26, 1  ;;  %v84_v30 = vrot.slane %v83_v27, 1  ;;  %150 = vst [vmem:[#allocation1 + $0x30] sm:$0xff] %v149_v24 }
   0xb   :  { %v98_v31 = vrot.slane %v97_v28, 1  ;;  %v111_v32 = vld [vmem:[#allocation0 + $0x3f] ss:$-1 sm:$0xff]  ;;  %164 = vst [vmem:[#allocation1 + $0x38] sm:$0xff] %v163_v25  ;;  %v125_v34 = vld [vmem:[#allocation0 + $0x4f] ss:$-1 sm:$0xff] }
   0xc   :  { %v112_v33 = vrot.slane %v111_v32, 1  ;;  %v139_v35 = vld [vmem:[#allocation0 + $0x5f] ss:$-1 sm:$0xff]  ;;  %74 = vst.msk [vmem:[#allocation1] sm:$0xff] %vm73_vm0, %v70_v29  ;;  %88 = vst.msk [vmem:[#allocation1 + $0x8] sm:$0xff] %vm73_vm0, %v84_v30  ;;  %v126_v36 = vrot.slane %v125_v34, 1 }
   0xd   :  { %102 = vst.msk [vmem:[#allocation1 + $0x10] sm:$0xff] %vm73_vm0, %v98_v31  ;;  %v140_v37 = vrot.slane %v139_v35, 1  ;;  %v153_v38 = vld [vmem:[#allocation0 + $0x6f] ss:$-1 sm:$0xff]  ;;  %v167_v39 = vld [vmem:[#allocation0 + $0x7f] ss:$-1 sm:$0xff] }
   0xe   :  { %116 = vst.msk [vmem:[#allocation1 + $0x18] sm:$0xff] %vm73_vm0, %v112_v33  ;;  %v154_v40 = vrot.slane %v153_v38, 1  ;;  %v168_v41 = vrot.slane %v167_v39, 1  ;;  %130 = vst.msk [vmem:[#allocation1 + $0x20] sm:$0xff] %vm73_vm0, %v126_v36 }
   0xf   :  { %144 = vst.msk [vmem:[#allocation1 + $0x28] sm:$0xff] %vm73_vm0, %v140_v37 }
  0x10   :  { %158 = vst.msk [vmem:[#allocation1 + $0x30] sm:$0xff] %vm73_vm0, %v154_v40  ;;  %172 = vst.msk [vmem:[#allocation1 + $0x38] sm:$0xff] %vm73_vm0, %v168_v41 }
  0x13   :  { %v214_v42 = vld [vmem:[#allocation1] sm:$0xff]  ;;  %v216_v43 = vld [vmem:[#allocation1 + $0x8] sm:$0xff] }
  0x14   :  { %v218_v44 = vld [vmem:[#allocation1 + $0x10] sm:$0xff]  ;;  %215 = vst [vmem:[%s330_s1] sm:$0xff] %v214_v42  ;;  %217 = vst [vmem:[%s330_s1 + $0x8] sm:$0xff] %v216_v43 }
  0x15   :  { %219 = vst [vmem:[%s330_s1 + $0x10] sm:$0xff] %v218_v44  ;;  %v220_v45 = vld [vmem:[#allocation1 + $0x18] sm:$0xff]  ;;  %v222_v46 = vld [vmem:[#allocation1 + $0x20] sm:$0xff] }
  0x16   :  { %221 = vst [vmem:[%s330_s1 + $0x18] sm:$0xff] %v220_v45  ;;  %v224_v47 = vld [vmem:[#allocation1 + $0x28] sm:$0xff]  ;;  %223 = vst [vmem:[%s330_s1 + $0x20] sm:$0xff] %v222_v46 }
  0x17   :  { %225 = vst [vmem:[%s330_s1 + $0x28] sm:$0xff] %v224_v47  ;;  %v226_v48 = vld [vmem:[#allocation1 + $0x30] sm:$0xff]  ;;  %v228_v49 = vld [vmem:[#allocation1 + $0x38] sm:$0xff] }
  0x18   :  { %227 = vst [vmem:[%s330_s1 + $0x30] sm:$0xff] %v226_v48  ;;  %229 = vst [vmem:[%s330_s1 + $0x38] sm:$0xff] %v228_v49 }

</bundles_post_ra>
